<compile_context>
chip_gen: v6e
topology: v6e:2x2x1
jax: 0.10.0
libtpu: 0.0.40
codegen_flags: <defaults>
</compile_context>

<pallas_src>
import jax
import jax.numpy as jnp
from jax.experimental import pallas as pl
from jax.experimental.pallas import tpu as pltpu


# ----------------------------- kernels ---------------------------------------


def _se_mlp(pooled, wrt, br, we, be):
    """pooled: (C, 1) f32. Returns sigmoid scale (C, 1) f32. Pure VPU/XLU math."""
    # reduce (1x1 conv, C -> Cr):  h[r] = sum_c W_r[r, c] * pooled[c] + b_r[r]
    h = jnp.sum(wrt * pooled, axis=0, keepdims=True) + br          # (1, Cr)
    h = jnp.maximum(h, 0.0)                                        # ReLU
    # expand (1x1 conv, Cr -> C):  s[c] = sum_r W_e[c, r] * h[r] + b_e[c]
    s = jnp.sum(we * h, axis=1, keepdims=True) + be                # (C, 1)
    return 1.0 / (1.0 + jnp.exp(-s))                               # sigmoid (EUP)


def _make_fused_kernel(M):
    """Single-pass SE: pool + MLP + rescale for one whole image slab."""
    inv_m = 1.0 / float(M)

    def kernel(x_ref, wrt_ref, br_ref, we_ref, be_ref, o_ref):
        x = x_ref[0]                                               # (C, M) native dtype
        pooled = jnp.sum(x.astype(jnp.float32), axis=1,
                         keepdims=True) * inv_m                    # (C, 1) f32
        scale = _se_mlp(pooled, wrt_ref[...], br_ref[...],
                        we_ref[...], be_ref[...])                  # (C, 1) f32
        # multiply in input dtype (scale in (0,1): safe to cast down)
        o_ref[0] = (x * scale.astype(x.dtype)).astype(o_ref.dtype)

    return kernel


def _make_pool_mlp_kernel(M, TM):
    """Tiled pass 1: accumulate channel sums over spatial tiles, then MLP."""
    inv_m = 1.0 / float(M)
    needs_mask = (M % TM) != 0

    def kernel(x_ref, wrt_ref, br_ref, we_ref, be_ref, scale_ref, acc_ref):
        j = pl.program_id(1)

        @pl.when(j == 0)
        def _():
            acc_ref[...] = jnp.zeros_like(acc_ref)

        x = x_ref[0].astype(jnp.float32)                           # (C, TM) f32
        if needs_mask:  # zero out-of-bounds lanes of the last partial tile
            col = jax.lax.broadcasted_iota(jnp.int32, x.shape, 1) + j * TM
            x = jnp.where(col < M, x, 0.0)
        acc_ref[...] += jnp.sum(x, axis=1, keepdims=True)          # (C, 1)

        @pl.when(j == pl.num_programs(1) - 1)
        def _():
            pooled = acc_ref[...] * inv_m                          # (C, 1)
            scale_ref[0] = _se_mlp(pooled, wrt_ref[...], br_ref[...],
                                   we_ref[...], be_ref[...])

    return kernel


def _apply_kernel(x_ref, scale_ref, o_ref):
    """Tiled pass 2: out = x * per-channel scale (broadcast over lanes)."""
    x = x_ref[0]                                                   # (C, TM)
    s = scale_ref[0].astype(x.dtype)                               # (C, 1)
    o_ref[0] = (x * s).astype(o_ref.dtype)


# ----------------------------- wrapper ----------------------------------------


def _pick_tm(M, C, itemsize, budget_bytes=2 * 1024 * 1024):
    """Spatial tile size: lane-aligned (multiple of 128) and VMEM-friendly."""
    if M <= 128 or M * C * itemsize <= budget_bytes:
        return M
    rows = budget_bytes // (C * itemsize)
    tm = max(128, (rows // 128) * 128)
    return int(min(tm, M))


def se_block_forward(x_nchw, wr_t, br, we, be, *,
                     force_two_pass=False, tile_m=None):
    N, C, H, W = x_nchw.shape
    Cr = wr_t.shape[1]
    M = H * W
    itemsize = jnp.dtype(x_nchw.dtype).itemsize

    x3 = x_nchw.reshape(N, C, M)                       # free reshape, NCHW-native
    wr_t = wr_t.astype(jnp.float32)                    # (C, Cr) = reduce.weight.T
    we = we.astype(jnp.float32)                        # (C, Cr) = expand.weight
    br2 = br.reshape(1, Cr).astype(jnp.float32)
    be2 = be.reshape(C, 1).astype(jnp.float32)

    weight_specs = [
        pl.BlockSpec((C, Cr), lambda *a: (0, 0)),
        pl.BlockSpec((1, Cr), lambda *a: (0, 0)),
        pl.BlockSpec((C, Cr), lambda *a: (0, 0)),
        pl.BlockSpec((C, 1), lambda *a: (0, 0)),
    ]

    # ---- fused single-pass path: one HBM read + one HBM write of x ----------
    if not force_two_pass and C * M * itemsize <= 2 * 1024 * 1024:
        out = pl.pallas_call(
            _make_fused_kernel(M),
            out_shape=jax.ShapeDtypeStruct((N, C, M), x_nchw.dtype),
            grid=(N,),
            in_specs=[pl.BlockSpec((1, C, M), lambda b: (b, 0, 0))] + weight_specs,
            out_specs=pl.BlockSpec((1, C, M), lambda b: (b, 0, 0)),
            compiler_params=pltpu.CompilerParams(
                dimension_semantics=("parallel",)),
        )(x3, wr_t, br2, we, be2)
        return out.reshape(N, C, H, W)

    # ---- tiled two-pass path for large feature maps -------------------------
    TM = int(tile_m) if tile_m is not None else _pick_tm(M, C, itemsize)
    assert TM == M or TM % 128 == 0, "spatial tile must be lane-aligned"
    Mt = pl.cdiv(M, TM)

    scale = pl.pallas_call(
        _make_pool_mlp_kernel(M, TM),
        out_shape=jax.ShapeDtypeStruct((N, C, 1), jnp.float32),
        grid=(N, Mt),
        in_specs=[pl.BlockSpec((1, C, TM), lambda b, j: (b, 0, j))] + weight_specs,
        out_specs=pl.BlockSpec((1, C, 1), lambda b, j: (b, 0, 0)),
        scratch_shapes=[pltpu.VMEM((C, 1), jnp.float32)],
        compiler_params=pltpu.CompilerParams(
            dimension_semantics=("parallel", "arbitrary")),
    )(x3, wr_t, br2, we, be2)

    out = pl.pallas_call(
        _apply_kernel,
        out_shape=jax.ShapeDtypeStruct((N, C, M), x_nchw.dtype),
        grid=(N, Mt),
        in_specs=[
            pl.BlockSpec((1, C, TM), lambda b, j: (b, 0, j)),
            pl.BlockSpec((1, C, 1), lambda b, j: (b, 0, 0)),
        ],
        out_specs=pl.BlockSpec((1, C, TM), lambda b, j: (b, 0, j)),
        compiler_params=pltpu.CompilerParams(
            dimension_semantics=("parallel", "parallel")),
    )(x3, scale)
    return out.reshape(N, C, H, W)


class SEBlockPallas:
    """Pallas TPU port of ultralytics-style SEBlock (eval-mode forward)."""

    def __init__(self, in_channels, rd_ratio=0.0625, *, key):
        c = in_channels
        cr = int(in_channels * rd_ratio)
        assert cr >= 1, "in_channels * rd_ratio must be >= 1"
        self.c, self.cr = c, cr
        ks = jax.random.split(key, 4)
        # torch: reduce.weight (Cr, C, 1, 1) -> stored transposed as (C, Cr)
        self.wr_t = 0.2 * jax.random.normal(ks[0], (c, cr), jnp.float32)
        self.br = 0.1 * jax.random.normal(ks[1], (cr,), jnp.float32)
        # torch: expand.weight (C, Cr, 1, 1) -> stored as (C, Cr)
        self.we = 0.2 * jax.random.normal(ks[2], (c, cr), jnp.float32)
        self.be = 0.1 * jax.random.normal(ks[3], (c,), jnp.float32)

    def __call__(self, x_nchw, *, force_two_pass=False, tile_m=None):
        return se_block_forward(x_nchw, self.wr_t, self.br, self.we, self.be,
                                force_two_pass=force_two_pass, tile_m=tile_m)


# ----------------------------- pure-JAX reference -----------------------------


def seblock_reference(x_nchw, m):
    pooled = jnp.mean(x_nchw, axis=(2, 3))                        # (N, C)
    h = jnp.maximum(pooled @ m.wr_t + m.br, 0.0)                  # (N, Cr)
    s = jax.nn.sigmoid(h @ m.we.T + m.be)                         # (N, C)
    return x_nchw * s[:, :, None, None]


if __name__ == "__main__":
    key = jax.random.PRNGKey(0)
    k_x, k_p = jax.random.split(key)
    N, C, H, W = 2, 32, 16, 16                  # rd_ratio=0.0625 -> Cr = 2
    x = jax.random.normal(k_x, (N, C, H, W), jnp.float32)

    module = SEBlockPallas(C, rd_ratio=0.0625, key=k_p)
    ref = jax.block_until_ready(seblock_reference(x, module))

    # fused single-pass path (default for shapes that fit VMEM)
    out = jax.block_until_ready(module(x))
    assert out.shape == (N, C, H, W), out.shape
    assert jnp.allclose(out, ref, atol=1e-4, rtol=1e-4), float(
        jnp.max(jnp.abs(out - ref)))

    # tiled two-pass path (used for large feature maps) — exercise it too
    out_tiled = jax.block_until_ready(module(x, force_two_pass=True, tile_m=128))
    assert jnp.allclose(out_tiled, ref, atol=1e-4, rtol=1e-4), float(
        jnp.max(jnp.abs(out_tiled - ref)))

    print("KERNEL_OK")
</pallas_src>

<mosaic_0001>
module attributes {stable_mosaic.version = 11 : i64} {
  func.func @kernel(%arg0: i32, %arg1: memref<1x32x256xf32, #tpu.memory_space<vmem>>, %arg2: memref<32x2xf32, #tpu.memory_space<vmem>>, %arg3: memref<1x2xf32, #tpu.memory_space<vmem>>, %arg4: memref<32x2xf32, #tpu.memory_space<vmem>>, %arg5: memref<32x1xf32, #tpu.memory_space<vmem>>, %arg6: memref<1x32x256xf32, #tpu.memory_space<vmem>>) attributes {dimension_semantics = [#tpu.dimension_semantics<parallel>], iteration_bounds = array<i64: 2>, scalar_prefetch = 0 : i64, scratch_operands = 0 : i64, tpu.core_type = #tpu.core_type<tc>, window_params = [{transform_indices = @transform_0, window_bounds = array<i64: 1, 32, 256>}, {pipeline_mode = #tpu.pipeline_mode<synchronous>, transform_indices = @transform_1, window_bounds = array<i64: 32, 2>}, {pipeline_mode = #tpu.pipeline_mode<synchronous>, transform_indices = @transform_2, window_bounds = array<i64: 1, 2>}, {pipeline_mode = #tpu.pipeline_mode<synchronous>, transform_indices = @transform_3, window_bounds = array<i64: 32, 2>}, {pipeline_mode = #tpu.pipeline_mode<synchronous>, transform_indices = @transform_4, window_bounds = array<i64: 32, 1>}, {transform_indices = @transform_5, window_bounds = array<i64: 1, 32, 256>}]} {
    %c0 = arith.constant 0 : index
    %c0_0 = arith.constant 0 : index
    %c0_1 = arith.constant 0 : index
    %0 = vector.load %arg1[%c0, %c0_0, %c0_1] : memref<1x32x256xf32, #tpu.memory_space<vmem>>, vector<1x32x256xf32>
    %1 = vector.shape_cast %0 : vector<1x32x256xf32> to vector<32x256xf32>
    %cst = arith.constant dense<0.000000e+00> : vector<32xf32>
    %2 = vector.multi_reduction <add>, %1, %cst [1] : vector<32x256xf32> to vector<32xf32>
    %3 = vector.shape_cast %2 : vector<32xf32> to vector<32x1xf32>
    %cst_2 = arith.constant 3.906250e-03 : f32
    %4 = vector.broadcast %cst_2 : f32 to vector<32x1xf32>
    %5 = arith.mulf %3, %4 : vector<32x1xf32>
    %c0_3 = arith.constant 0 : index
    %c0_4 = arith.constant 0 : index
    %6 = vector.load %arg2[%c0_3, %c0_4] : memref<32x2xf32, #tpu.memory_space<vmem>>, vector<32x2xf32>
    %c0_5 = arith.constant 0 : index
    %c0_6 = arith.constant 0 : index
    %7 = vector.load %arg3[%c0_5, %c0_6] : memref<1x2xf32, #tpu.memory_space<vmem>>, vector<1x2xf32>
    %c0_7 = arith.constant 0 : index
    %c0_8 = arith.constant 0 : index
    %8 = vector.load %arg4[%c0_7, %c0_8] : memref<32x2xf32, #tpu.memory_space<vmem>>, vector<32x2xf32>
    %c0_9 = arith.constant 0 : index
    %c0_10 = arith.constant 0 : index
    %9 = vector.load %arg5[%c0_9, %c0_10] : memref<32x1xf32, #tpu.memory_space<vmem>>, vector<32x1xf32>
    %10 = vector.broadcast %5 : vector<32x1xf32> to vector<32x2xf32>
    %11 = arith.mulf %6, %10 : vector<32x2xf32>
    %cst_11 = arith.constant dense<0.000000e+00> : vector<2xf32>
    %12 = vector.multi_reduction <add>, %11, %cst_11 [0] : vector<32x2xf32> to vector<2xf32>
    %13 = vector.shape_cast %12 : vector<2xf32> to vector<1x2xf32>
    %14 = arith.addf %13, %7 : vector<1x2xf32>
    %cst_12 = arith.constant 0.000000e+00 : f32
    %15 = vector.broadcast %cst_12 : f32 to vector<1x2xf32>
    %16 = arith.maximumf %14, %15 : vector<1x2xf32>
    %17 = vector.broadcast %16 : vector<1x2xf32> to vector<32x2xf32>
    %18 = arith.mulf %8, %17 : vector<32x2xf32>
    %cst_13 = arith.constant dense<0.000000e+00> : vector<32xf32>
    %19 = vector.multi_reduction <add>, %18, %cst_13 [1] : vector<32x2xf32> to vector<32xf32>
    %20 = vector.shape_cast %19 : vector<32xf32> to vector<32x1xf32>
    %21 = arith.addf %20, %9 : vector<32x1xf32>
    %cst_14 = arith.constant 0.000000e+00 : f32
    %22 = vector.broadcast %cst_14 : f32 to vector<32x1xf32>
    %23 = arith.subf %22, %21 : vector<32x1xf32>
    %24 = math.exp %23 : vector<32x1xf32>
    %cst_15 = arith.constant 1.000000e+00 : f32
    %25 = vector.broadcast %cst_15 : f32 to vector<32x1xf32>
    %26 = arith.addf %25, %24 : vector<32x1xf32>
    %cst_16 = arith.constant 1.000000e+00 : f32
    %27 = vector.broadcast %cst_16 : f32 to vector<32x1xf32>
    %28 = arith.divf %27, %26 : vector<32x1xf32>
    %29 = vector.broadcast %28 : vector<32x1xf32> to vector<32x256xf32>
    %30 = arith.mulf %1, %29 : vector<32x256xf32>
    %c0_17 = arith.constant 0 : index
    %c0_18 = arith.constant 0 : index
    %c0_19 = arith.constant 0 : index
    %31 = vector.load %arg6[%c0_17, %c0_18, %c0_19] : memref<1x32x256xf32, #tpu.memory_space<vmem>>, vector<1x32x256xf32>
    %32 = vector.shape_cast %31 : vector<1x32x256xf32> to vector<32x256xf32>
    %33 = vector.shape_cast %30 : vector<32x256xf32> to vector<1x32x256xf32>
    tpu.vector_store %arg6[%c0_17, %c0_18, %c0_19], %33 {strides = array<i32>} : memref<1x32x256xf32, #tpu.memory_space<vmem>>, vector<1x32x256xf32>,
    return
  }
  func.func @transform_0(%arg0: i32) -> (i32, i32, i32) {
    %c0_i32 = arith.constant 0 : i32
    %c0_i32_0 = arith.constant 0 : i32
    %c0_i32_1 = arith.constant 0 : i32
    return %arg0, %c0_i32, %c0_i32_0 : i32, i32, i32
  }
  func.func @transform_1(%arg0: i32) -> (i32, i32) {
    %c0_i32 = arith.constant 0 : i32
    %c0_i32_0 = arith.constant 0 : i32
    %c0_i32_1 = arith.constant 0 : i32
    return %c0_i32, %c0_i32_0 : i32, i32
  }
  func.func @transform_2(%arg0: i32) -> (i32, i32) {
    %c0_i32 = arith.constant 0 : i32
    %c0_i32_0 = arith.constant 0 : i32
    %c0_i32_1 = arith.constant 0 : i32
    return %c0_i32, %c0_i32_0 : i32, i32
  }
  func.func @transform_3(%arg0: i32) -> (i32, i32) {
    %c0_i32 = arith.constant 0 : i32
    %c0_i32_0 = arith.constant 0 : i32
    %c0_i32_1 = arith.constant 0 : i32
    return %c0_i32, %c0_i32_0 : i32, i32
  }
  func.func @transform_4(%arg0: i32) -> (i32, i32) {
    %c0_i32 = arith.constant 0 : i32
    %c0_i32_0 = arith.constant 0 : i32
    %c0_i32_1 = arith.constant 0 : i32
    return %c0_i32, %c0_i32_0 : i32, i32
  }
  func.func @transform_5(%arg0: i32) -> (i32, i32, i32) {
    %c0_i32 = arith.constant 0 : i32
    %c0_i32_0 = arith.constant 0 : i32
    %c0_i32_1 = arith.constant 0 : i32
    return %arg0, %c0_i32, %c0_i32_0 : i32, i32, i32
  }
}

</mosaic_0001>

<bundles_post_ra>
// kernel: tpu_custom_call.1
= control target key start
LH: loop header
LB: loop body
LE: loop exit
PB: predicated region body
PF: predicated region fallthrough
CT: control target
= control target key end

     0   :  { %10 = vsyncpa [#allocation3], 0  ;;  %s924_s0 = inlined_call_operand.hbm [shape: f32[2,32,256], index: 0, kind: input, shape index: {}]   ;;  %s925_s1 = inlined_call_operand.vmem [shape: f32[32,2], index: 1, kind: input, shape index: {}]   ;;  %s926_s2 = inlined_call_operand.vmem [shape: f32[1,2], index: 2, kind: input, shape index: {}]   ;;  %s927_s3 = inlined_call_operand.vmem [shape: f32[32,2], index: 3, kind: input, shape index: {}]   ;;  %s928_s4 = inlined_call_operand.vmem [shape: f32[32,1], index: 4, kind: input, shape index: {}]   ;;  %s929_s5 = inlined_call_operand.hbm [shape: f32[2,32,256], index: 5, kind: output, shape index: {}]  }
   0x1   :  { %12 = vsyncpa [#allocation3 + $0x1], 0 }
   0x2   :  { %13 = vsyncpa [#allocation4], 0 }
   0x3   :  { %15 = vsyncpa [#allocation4 + $0x1], 0  ;;  %s687_s18 = smov 0   ;;  %s689_s19 = smov 0  }
   0x4   :  { %s691_s20 = smov 0   ;;  %s693_s21 = smov 0  }
   0x5 LB: > { %s708_s22 = sadd.s32 4294967295, %s648_s21   ;;  %s471_s23 = sadd.s32 4294967294, %s648_s21   ;;  %s648_s21 = sphi %s693_s21, %s944_s21   ;;  %s644_s20 = sphi %s691_s20, %s943_s20   ;;  %s640_s19 = sphi %s689_s19, %s942_s19   ;;  %s636_s18 = sphi %s687_s18, %s941_s18  }
   0x6   : > { %s712_s24 = sadd.s32 1, %s648_s21   ;;  %s28_s25 = sadd.s32 1, %s644_s20 }
   0x7   : > { %s25_s26 = ssub.s32 %s648_s21, %s712_s24  ;;  %p35_p0 = scmp.ne.s32.totalorder %s644_s20, %s640_s19 }
   0x8   : > { %p26_p1 = scmp.eq.s32.totalorder %s25_s26, 0  ;;  %p36_p2 = scmp.eq.s32.totalorder %s648_s21, 0 }
   0x9   : > { %p41_p3 = scmp.ne.s32.totalorder %s640_s19, %s636_s18  ;;  %p42_p4 = scmp.eq.s32.totalorder %s708_s22, 0 }
   0xa   : > { %s724_s27 = scalar_select %p26_p1, %s644_s20, %s28_s25  }
   0xb   : > { %p726_p5 = por %p36_p2, %p35_p0  ;;  %p730_p6 = por %p42_p4, %p41_p3 }
   0xc   : > { %p149_p7 = scmp.eq.s32.totalorder %s708_s22, 1  ;;  %p155_p8 = scmp.eq.s32.totalorder %s471_s23, 1 }
   0xd   : > { %s933_s29 = scalar_select %p730_p6, 1, 0 }
   0xe   : > { %p499_p10 = scmp.lt.s32.totalorder %s648_s21, 2  ;;  %p737_p11 = por %p149_p7, %p35_p0 }
   0xf   : > { %p741_p12 = por %p155_p8, %p41_p3  ;;  %s187_s7 = sand.u32 1, %s644_s20  }
  0x10   : > { %s934_s30 = scalar_select %p737_p11, 1, 0 }
  0x11   : > { %s935_s6 = scalar_select %p741_p12, 1, 0 }
  0x12   : > { %s485_s8 = sshll.u32 %s648_s21, 10  ;;  %s474_s9 = sshll.u32 %s187_s7, 6 }
  0x13   : > { %s750_s12 = scalar_lea.hbm %s924_s0, %s485_s8  ;;  %s191_s13 = scalar_lea.vmem [#allocation2], %s474_s9 }
  0x14   : > { %s198_s14 = sshll.u32 %s191_s13, 4  ;;  %p754_p13 = pnand %p499_p10, %p726_p5  ;;  %s758_s14 = int_to_ptr.vmem [resolvable:$true] %s198_s14 }
  0x15   : > { %s760_s16 = scalar_lea.sflag [#allocation3], %s187_s7  ;;  %s556_s17 = scalar_lea.hbm %s750_s12, 1024 }
  0x16   : > { %p557_p0 = scmp.ne.s32.totalorder %s750_s12, %s556_s17  ;;  %p558_p1 = pneg %p754_p13 }
  0x17   : > { %s561_s26 = scalar_lea.hbm %s924_s0, 2048  ;;  %p562_p4 = scmp.lt.s32.totalorder %s750_s12, %s924_s0 }
  0x18   : > { %p559_p2 = pnand %p558_p1, %p557_p0  ;;  %p563_p5 = scmp.lt.s32.totalorder %s561_s26, %s556_s17 }
  0x1a   : > { %p560_p3 = pneg %p559_p2  ;;  %p564_p7 = por %p563_p5, %p562_p4 }
  0x1c   : > { %p565_p8 = pnand %p564_p7, %p560_p3 }
  0x1e   : > { %568 = shalt.err (!%p565_p8)
}
  0x1f   : > { %s569_s7 = scalar_lea.vmem %s758_s14, 1024  ;;  %s650_s9 = smov [#allocation2]  }
  0x20   : > { %p570_p10 = scmp.ne.s32.totalorder %s758_s14, %s569_s7  ;;  %s574_s10 = sshll.u32 %s650_s9, 4  ;;  %s575_s10 = int_to_ptr.vmem [resolvable:$false] %s574_s10 }
  0x21   : > { %s576_s11 = scalar_lea.vmem %s575_s10, 2048  ;;  %p577_p2 = scmp.lt.s32.totalorder %s758_s14, %s575_s10 }
  0x22   : > { %p572_p9 = pnand %p570_p10, %p558_p1  ;;  %p578_p12 = scmp.lt.s32.totalorder %s576_s11, %s569_s7 }
  0x24   : > { %p573_p0 = pneg %p572_p9  ;;  %p579_p11 = por %p578_p12, %p577_p2 }
  0x26   : > { %p580_p6 = pnand %p579_p11, %p573_p0 }
  0x28   : > { %583 = shalt.err (!%p580_p6)
}
  0x29   : > { %s651_s13 = smov 256   ;;  %s652_s17 = smov 16  }
  0x2a   : > { %494 = dma.hbm_to_vmem [thread:$0]  (!%p754_p13), %s750_s12, 1024, %s758_s14, %s760_s16, %s651_s13, %s651_s13, %s652_s17  }
  0x2b   : > { %p477_p9 = scmp.ge.s32.totalorder %s648_s21, 1  ;;  %p206_p1 = scmp.lt.s32.totalorder %s648_s21, 3 }
  0x2d   : > { %p207_p3 = pnand %p477_p9, %p206_p1 }
  0x2e   : > { %s784_s23 = sand.u32 (!%p207_p3), 1, %s640_s19   ;;  %p937_p6 = scmp.ne.s32.totalorder (!%p207_p3), %s933_s29, 0 }
  0x2f   : > { %210 = sbr.rel (%p207_p3) target bundleno = 553 (0x229), region = 40  ;;  %s478_s25 = sshll.u32 (!%p207_p3), %s784_s23, 6 }
  0x30   : > { %s213_s26 = scalar_lea.sflag (!%p207_p3), [#allocation3], %s784_s23  ;;  %s216_s28 = scalar_lea.vmem (!%p207_p3), [#allocation2], %s478_s25 }
  0x34   : > { %627 = dma.done.wait (%p937_p6), %s213_s26, 1024  }
  0x35   : > { %629 = vsyncadd (%p937_p6), %s213_s26, 4294966272  ;;  %v794_v0 = vld [vmem:[%s216_s28] sm:$0xff]  ;;  %v796_v1 = vld [vmem:[%s216_s28 + $0x8] sm:$0xff]  ;;  %vm284_vm0 = vcmask 15360   ;;  %v300_v38 = vlaneseq  ;;  %v653_v60 = vmov 0   ;;  %s242_s26 = scalar_lea.vmem [#allocation5], %s478_s25 }
  0x36   : > { %v798_v2 = vld [vmem:[%s216_s28 + $0x20] sm:$0xff]  ;;  %v251_v3 = vadd.f32 %v796_v1, %v794_v0  ;;  %v802_v4 = vld [vmem:[%s216_s28 + $0x28] sm:$0xff]  ;;  %v804_v5 = vld [vmem:[%s216_s28 + $0x10] sm:$0xff]  ;;  %539 = vset.pattern.permute.xlu1 %v653_v60  ;;  %538 = vset.pattern.permute.xlu0 %v653_v60  ;;  %s486_s29 = sshll.u32 %s708_s22, 10  ;;  %s385_s22 = scalar_lea.sflag [#allocation4], %s784_s23 }
  0x37   : > { %v806_v6 = vld [vmem:[%s216_s28 + $0x18] sm:$0xff]  ;;  %v257_v7 = vadd.f32 %v802_v4, %v798_v2  ;;  %v810_v8 = vld [vmem:[%s216_s28 + $0x30] sm:$0xff]  ;;  %v267_v15 = vld [vmem:[%s925_s1] sm:$0xff]  ;;  %v301_v41 = vshrl.u32 %v300_v38, 7  ;;  %s879_s14 = scalar_lea.hbm %s929_s5, %s486_s29  ;;  %p938_p12 = scmp.ne.s32.totalorder %s934_s30, 0 }
  0x38   : > { %v812_v9 = vld [vmem:[%s216_s28 + $0x38] sm:$0xff]  ;;  %252 = vadd.xlane.f32.xlu0 %v251_v3  ;;  %v254_v10 = vadd.f32 %v806_v6, %v804_v5  ;;  %v269_v17 = vld [vmem:[%s925_s1 + $0x10] sm:$0xff]  ;;  %v268_v18 = vld [vmem:[%s925_s1 + $0x8] sm:$0xff]  ;;  %s398_s28 = sshll.u32 %s242_s26, 4  ;;  %s654_s16 = smov [#allocation5]   ;;  %s874_s28 = int_to_ptr.vmem [resolvable:$true] %s398_s28 }
  0x39   : > { %258 = vadd.xlane.f32.xlu1 %v257_v7  ;;  %v260_v11 = vadd.f32 %v812_v9, %v810_v8  ;;  %v270_v22 = vld [vmem:[%s925_s1 + $0x18] sm:$0xff]  ;;  %v271_v42 = vld [vmem:[%s926_s2] sm:$0x1]  ;;  %v302_v45 = vsub.s32 0, %v301_v41  ;;  %v273_v47 = vld [vmem:[%s927_s3 + $0x8] sm:$0xff]  ;;  %s584_s15 = scalar_lea.vmem %s874_s28, 1024 }
  0x3a   : > { %v272_v48 = vld [vmem:[%s927_s3] sm:$0xff]  ;;  %v275_v50 = vld [vmem:[%s927_s3 + $0x18] sm:$0xff]  ;;  %v274_v51 = vld [vmem:[%s927_s3 + $0x10] sm:$0xff]  ;;  %p585_p11 = scmp.ne.s32.totalorder %s874_s28, %s584_s15  ;;  %s588_s8 = sshll.u32 %s654_s16, 4  ;;  %s589_s8 = int_to_ptr.vmem [resolvable:$false] %s588_s8 }
  0x3b   : > { %v277_v61 = vld [vmem:[%s928_s4 + $0x8] sm:$0xff]  ;;  %v276_v62 = vld [vmem:[%s928_s4] sm:$0xff]  ;;  %s590_s7 = scalar_lea.vmem %s589_s8, 2048  ;;  %p591_p5 = scmp.lt.s32.totalorder %s874_s28, %s589_s8 }
  0x3c   : > { %255 = vadd.xlane.f32.xlu0 %v254_v10  ;;  %p586_p13 = pnand %p585_p11, %p938_p12  ;;  %p592_p7 = scmp.lt.s32.totalorder %s590_s7, %s584_s15 }
  0x3d   : > { %261 = vadd.xlane.f32.xlu1 %v260_v11  ;;  %v279_v11 = vld [vmem:[%s928_s4 + $0x18] sm:$0xff] }
  0x3e   : > { %p587_p4 = pneg %p586_p13  ;;  %p593_p8 = por %p592_p7, %p591_p5 }
  0x40   : > { %p594_p10 = pnand %p593_p8, %p587_p4 }
  0xc1   : > { %v253_v12 = vpop.xlane.xlu0 %252 }
  0xc2   : > { %v263_v13 = vmul.f32 0.00390625, %v253_v12  ;;  %v259_v14 = vpop.xlane.xlu1 %258  ;;  %v278_v12 = vld [vmem:[%s928_s4 + $0x10] sm:$0xff] }
  0xc3   : > { %v265_v16 = vmul.f32 0.00390625, %v259_v14 }
  0xc4   : > { %v280_v20 = vmul.f32 %v267_v15, %v263_v13 }
  0xc5   : > { %v256_v19 = vpop.xlane.xlu0 %255  ;;  %v282_v25 = vmul.f32 %v269_v17, %v265_v16 }
  0xc6   : > { %v264_v21 = vmul.f32 0.00390625, %v256_v19  ;;  %v262_v23 = vpop.xlane.xlu1 %261  ;;  %v285_v28 = vsel %vm284_vm0, %v280_v20, 0.0 }
  0xc7   : > { %v266_v24 = vmul.f32 0.00390625, %v262_v23  ;;  %v288_v31 = vsel %vm284_vm0, %v282_v25, 0.0 }
  0xc8   : > { %v281_v26 = vmul.f32 %v268_v18, %v264_v21 }
  0xc9   : > { %v283_v27 = vmul.f32 %v270_v22, %v266_v24 }
  0xca   : > { %v286_v29 = vsel %vm284_vm0, %v281_v26, 0.0 }
  0xcb   : > { %v287_v30 = vadd.f32 %v286_v29, %v285_v28  ;;  %v290_v32 = vsel %vm284_vm0, %v283_v27, 0.0 }
  0xcd   : > { %v289_v33 = vadd.f32 %v288_v31, %v287_v30 }
  0xcf   : > { %v291_v34 = vadd.f32 %v290_v32, %v289_v33 }
  0xd1   : > { %v292_v35 = vrot.slane %v291_v34, 4 }
  0xd3   : > { %v293_v36 = vadd.f32 %v292_v35, %v291_v34 }
  0xd5   : > { %v294_v37 = vrot.slane %v293_v36, 2 }
  0xd7   : > { %v295_v39 = vadd.f32 %v294_v37, %v293_v36 }
  0xd9   : > { %v296_v40 = vrot.slane %v295_v39, 1 }
  0xdb   : > { %v297_v43 = vadd.f32 %v296_v40, %v295_v39 }
  0xdd   : > { %v298_v44 = vadd.f32 %v297_v43, %v271_v42 }
  0xdf   : > { %v299_v46 = vmax.f32 %v298_v44, 0.0 }
  0xe1   : > { %v303_v49 = vrot.slane %v299_v46, %v302_v45 }
  0xe3   : > { %v305_v52 = vmul.f32 %v303_v49, %v273_v47  ;;  %v304_v53 = vmul.f32 %v303_v49, %v272_v48  ;;  %v307_v56 = vmul.f32 %v303_v49, %v275_v50  ;;  %v306_v57 = vmul.f32 %v303_v49, %v274_v51 }
  0xe5   : > { %v311_v54 = vsel %vm284_vm0, %v305_v52, 0.0  ;;  %v308_v55 = vsel %vm284_vm0, %v304_v53, 0.0  ;;  %v317_v58 = vsel %vm284_vm0, %v307_v56, 0.0  ;;  %v314_v59 = vsel %vm284_vm0, %v306_v57, 0.0 }
  0xe6   : > { %312 = vadd.xlane.f32.xlu1 %v311_v54  ;;  %309 = vadd.xlane.f32.xlu0 %v308_v55 }
  0xea   : > { %318 = vadd.xlane.f32.xlu1 %v317_v58  ;;  %315 = vadd.xlane.f32.xlu0 %v314_v59 }
 0x16f   : > { %v313_v63 = vpop.xlane.xlu1 %312  ;;  %v310_v3 = vpop.xlane.xlu0 %309 }
 0x170   : > { %v321_v7 = vadd.f32 %v313_v63, %v277_v61  ;;  %v320_v10 = vadd.f32 %v310_v3, %v276_v62 }
 0x172   : > { %v325_v13 = vsub.f32 0.0, %v321_v7  ;;  %v324_v14 = vsub.f32 0.0, %v320_v10 }
 0x173   : > { %v319_v15 = vpop.xlane.xlu1 %318  ;;  %v316_v16 = vpop.xlane.xlu0 %315 }
 0x174   : > { %v330_v17 = vmul.f32 1.442695, %v325_v13  ;;  %v328_v18 = vmul.f32 1.442695, %v324_v14  ;;  %v323_v19 = vadd.f32 %v319_v15, %v279_v11  ;;  %v322_v20 = vadd.f32 %v316_v16, %v278_v12 }
 0x176   : > { %540 = vpow2.f32 %v330_v17  ;;  %v327_v21 = vsub.f32 0.0, %v323_v19  ;;  %v326_v22 = vsub.f32 0.0, %v322_v20 }
 0x177   : > { %542 = vpow2.f32 %v328_v18 }
 0x178   : > { %v334_v23 = vmul.f32 1.442695, %v327_v21  ;;  %v332_v24 = vmul.f32 1.442695, %v326_v22 }
 0x17a   : > { %544 = vpow2.f32 %v334_v23 }
 0x17b   : > { %546 = vpow2.f32 %v332_v24 }
 0x183   : > { %v541_v25 = vpop.eup %540 }
 0x184   : > { %v543_v26 = vpop.eup %542  ;;  %v337_v27 = vadd.f32 1.0, %v541_v25 }
 0x185   : > { %v336_v28 = vadd.f32 1.0, %v543_v26 }
 0x186   : > { %548 = vrcp.f32 %v337_v27 }
 0x187   : > { %v545_v29 = vpop.eup %544  ;;  %550 = vrcp.f32 %v336_v28 }
 0x188   : > { %v547_v30 = vpop.eup %546  ;;  %v339_v32 = vadd.f32 1.0, %v545_v29 }
 0x189   : > { %v338_v31 = vadd.f32 1.0, %v547_v30 }
 0x18b   : > { %552 = vrcp.f32 %v338_v31 }
 0x18c   : > { %554 = vrcp.f32 %v339_v32 }
 0x193   : > { %v549_v33 = vpop.eup %548 }
 0x194   : > { %v551_v34 = vpop.eup %550  ;;  %355 = vperm.xlu1 %539, %v549_v33  }
 0x195   : > { %350 = vperm.xlu0 %538, %v551_v34  }
 0x198   : > { %v553_v35 = vpop.eup %552 }
 0x199   : > { %360 = vperm.xlu1 %539, %v553_v35   ;;  %v555_v36 = vpop.eup %554 }
 0x19d   : > { %365 = vperm.xlu1 %539, %v555_v36  }
 0x20f   : > { %v356_v37 = vpop.permute.xlu1 %355 }
 0x210   : > { %v370_v38 = vmul.f32 %v356_v37, %v804_v5  ;;  %v371_v39 = vmul.f32 %v356_v37, %v806_v6  ;;  %v351_v40 = vpop.permute.xlu0 %350 }
 0x211   : > { %v368_v41 = vmul.f32 %v351_v40, %v794_v0  ;;  %v369_v42 = vmul.f32 %v351_v40, %v796_v1 }
 0x212   : > { %378 = vst [vmem:[%s242_s26 + $0x10] sm:$0xff] %v370_v38  ;;  %379 = vst [vmem:[%s242_s26 + $0x18] sm:$0xff] %v371_v39 }
 0x213   : > { %376 = vst [vmem:[%s242_s26] sm:$0xff] %v368_v41  ;;  %377 = vst [vmem:[%s242_s26 + $0x8] sm:$0xff] %v369_v42 }
 0x214   : > { %v361_v43 = vpop.permute.xlu1 %360 }
 0x215   : > { %v372_v44 = vmul.f32 %v361_v43, %v798_v2  ;;  %v373_v5 = vmul.f32 %v361_v43, %v802_v4 }
 0x217   : > { %380 = vst [vmem:[%s242_s26 + $0x20] sm:$0xff] %v372_v44  ;;  %381 = vst [vmem:[%s242_s26 + $0x28] sm:$0xff] %v373_v5 }
 0x218   : > { %v366_v0 = vpop.permute.xlu1 %365 }
 0x219   : > { %v374_v1 = vmul.f32 %v366_v0, %v810_v8  ;;  %v375_v2 = vmul.f32 %v366_v0, %v812_v9 }
 0x21b   : > { %382 = vst [vmem:[%s242_s26 + $0x30] sm:$0xff] %v374_v1  ;;  %383 = vst [vmem:[%s242_s26 + $0x38] sm:$0xff] %v375_v2 }
 0x21c   : > { %597 = shalt.err (!%p594_p10)
}
 0x21d   : > { %s598_s9 = scalar_lea.hbm %s879_s14, 1024  ;;  %s602_s13 = scalar_lea.hbm %s929_s5, 2048 }
 0x21e   : > { %p599_p0 = scmp.ne.s32.totalorder %s879_s14, %s598_s9  ;;  %p603_p1 = scmp.lt.s32.totalorder %s879_s14, %s929_s5 }
 0x21f   : > { %p604_p3 = scmp.lt.s32.totalorder %s602_s13, %s598_s9 }
 0x220   : > { %p600_p2 = pnand %p599_p0, %p938_p12 }
 0x221   : > { %p605_p6 = por %p604_p3, %p603_p1 }
 0x222   : > { %p601_p9 = pneg %p600_p2 }
 0x224   : > { %p606_p11 = pnand %p605_p6, %p601_p9 }
 0x226   : > { %609 = shalt.err (!%p606_p11)
}
 0x227   : > { %s655_s29 = smov 256   ;;  %s656_s25 = smov 16  }
 0x228   : > { %489 = dma.vmem_to_hbm [thread:$0]  (%p938_p12), %s874_s28, 1024, %s879_s14, %s385_s22, %s655_s29, %s655_s29, %s656_s25  }
 0x229 PF: > { %s413_s12 = sand.u32 1, %s636_s18   ;;  %p939_p13 = scmp.ne.s32.totalorder %s935_s6, 0 }
 0x22a   : > { %p940_p4 = scmp.ge.s32.totalorder %s648_s21, 2  ;;  %s414_s15 = scalar_lea.sflag [#allocation4], %s413_s12 }
 0x22c   : > { %p496_p5 = pnand %p940_p4, %p939_p13 }
 0x22e   : > { %p497_p7 = pneg %p496_p5 }
 0x230   : > { %631 = dma.done.wait (%p497_p7), %s414_s15, 1024  }
 0x231   : > { %633 = vsyncadd (%p497_p7), %s414_s15, 4294966272  ;;  %p18_p8 = scmp.ge.s32.totalorder %s712_s24, 4   ;;  %s941_s18 = smov %s640_s19 }
 0x232   : > { %s942_s19 = smov %s644_s20  ;;  %s943_s20 = smov %s724_s27 }
 0x233   : > { %s944_s21 = smov %s712_s24  ;;  %20 = sbr.rel (!%p18_p8) target bundleno = 5 (0x5), region = 85 }
 0x238   :  { %419 = vsyncpa [#allocation3], 1 }
 0x239   :  { %421 = vsyncpa [#allocation3 + $0x1], 1 }
 0x23a   :  { %422 = vsyncpa [#allocation4], 1 }
 0x23b   :  { %424 = vsyncpa [#allocation4 + $0x1], 1 }

</bundles_post_ra>
